<compile_context>
chip_gen: v5e
topology: v5e:2x2
jax: 0.10.0
libtpu: 0.0.40
codegen_flags: <defaults>
</compile_context>

<pallas_src>
import jax
import jax.numpy as jnp
from jax.experimental import pallas as pl
from jax.experimental.pallas import tpu as pltpu


def _coemb_kernel(idx_ref, tab_ref, out_ref):
    # idx_ref: (TN, K)   int32 -- attribute indices (PyTorch layout, no transpose)
    # tab_ref: (V, K*D)  f32   -- combined table slab: tab[v, k*D:(k+1)*D] = table_k[v]
    # out_ref: (TN, K*D) f32   -- concatenated embeddings, final PyTorch layout
    tn, k = idx_ref.shape
    v, kd = tab_ref.shape
    d = kd // k

    ids = idx_ref[...]                                            # (TN, K) int32
    # Hoisted lane expansion, done ONCE per tile: ids_b[:, kk*D + j] = ids[:, kk]
    ids_b = jnp.concatenate(
        [jnp.broadcast_to(ids[:, kk:kk + 1], (tn, d)) for kk in range(k)],
        axis=-1,
    )                                                             # (TN, K*D)

    tab = tab_ref[...]                                            # (V, K*D): ~2 vregs, resident
    acc = jnp.zeros((tn, kd), dtype=out_ref.dtype)
    for vv in range(v):                                           # unrolled: V_max full-vreg selects
        # (1, K*D) row; the sublane broadcast inside jnp.where is XLU work,
        # free under the VALU-bound compare/select loop.
        acc = jnp.where(ids_b == vv, tab[vv:vv + 1, :], acc)
    out_ref[...] = acc                                            # single unmasked 128-lane store


def co_embedding(inputs_nk, tables_kvd, *, tn=None):
    """inputs_nk: int [N, K]; tables_kvd: float32 [K, V_max, D] -> float32 [N, K*D]."""
    n, k = inputs_nk.shape
    k2, v, d = tables_kvd.shape
    assert k == k2
    kd = k * d

    # One-time relayout to the combined lane-dense slab (V_max, K*D).
    tab2 = jnp.transpose(tables_kvd, (1, 0, 2)).reshape(v, kd)

    if tn is None:
        tn = min(1024, pl.cdiv(n, 8) * 8)       # lane-dense tile, multiple of 8 sublanes
    assert tn % 8 == 0, "TN must be a multiple of 8 sublanes"
    n_pad = pl.cdiv(n, tn) * tn

    idx = inputs_nk.astype(jnp.int32)
    if n_pad != n:
        # Padded rows read table row 0 (the zero pad row) and are sliced off below.
        idx = jnp.pad(idx, ((0, n_pad - n), (0, 0)))

    out = pl.pallas_call(
        _coemb_kernel,
        out_shape=jax.ShapeDtypeStruct((n_pad, kd), tables_kvd.dtype),
        grid_spec=pltpu.PrefetchScalarGridSpec(
            num_scalar_prefetch=0,
            grid=(n_pad // tn,),
            in_specs=[
                pl.BlockSpec((tn, k), lambda i: (i, 0),
                             memory_space=pltpu.MemorySpace.VMEM),
                # Constant index_map: table slab stays VMEM-resident across grid steps.
                pl.BlockSpec((v, kd), lambda i: (0, 0),
                             memory_space=pltpu.MemorySpace.VMEM),
            ],
            out_specs=pl.BlockSpec((tn, kd), lambda i: (i, 0),
                                   memory_space=pltpu.MemorySpace.VMEM),
        ),
        compiler_params=pltpu.CompilerParams(
            dimension_semantics=("parallel",),   # shard the N-grid across TCs (v7x megacore)
        ),
    )(idx, tab2)
    return out if n_pad == n else out[:n]


def build_tables(key, vocab_sizes, attr_dim, pad_id):
    """Per-key embedding tables, zero pad row, vocab padded to V_max -> (K, V_max, D)."""
    v_max = max(vocab_sizes)
    tables = []
    for i, vs in enumerate(vocab_sizes):
        sub = jax.random.fold_in(key, i)
        t = jax.random.normal(sub, (vs, attr_dim), dtype=jnp.float32) * 0.02
        t = t.at[pad_id, :].set(0.0)                     # padding_idx row is zero
        t = jnp.pad(t, ((0, v_max - vs), (0, 0)))        # pad vocab dim to V_max (zero rows)
        tables.append(t)
    return jnp.stack(tables, axis=0)


def build_inputs(key, vocab_sizes, n_tokens):
    cols = []
    for i, vs in enumerate(vocab_sizes):
        sub = jax.random.fold_in(key, i)
        cols.append(jax.random.randint(sub, (n_tokens,), 0, vs, dtype=jnp.int32))
    return jnp.stack(cols, axis=1)                       # (N, K)


if __name__ == "__main__":
    key = jax.random.PRNGKey(0)

    # small config consistent with the module:
    #   key_order = [type, animacy, number, gender], attr_dim = 32, pad = 0
    vocab_sizes = [10, 5, 4, 6]
    attr_dim = 32
    pad_id = 0
    k = len(vocab_sizes)

    tables = build_tables(key, vocab_sizes, attr_dim, pad_id)    # (K, V_max, D)

    # --- test 1: tiny batch, single grid step ---
    n_tokens = 8
    inputs = build_inputs(jax.random.fold_in(key, 100), vocab_sizes, n_tokens)   # (N, K)
    out = jax.block_until_ready(co_embedding(inputs, tables))
    ref = jnp.concatenate([tables[i][inputs[:, i]] for i in range(k)], axis=-1)
    assert out.shape == (n_tokens, k * attr_dim)
    assert bool(jnp.array_equal(out, ref)), "mismatch vs reference (test 1)"

    # --- test 2: N not a multiple of the tile, multi-step grid (exercises padding path) ---
    n_tokens2 = 50
    inputs2 = build_inputs(jax.random.fold_in(key, 200), vocab_sizes, n_tokens2)
    out2 = jax.block_until_ready(co_embedding(inputs2, tables, tn=16))
    ref2 = jnp.concatenate([tables[i][inputs2[:, i]] for i in range(k)], axis=-1)
    assert out2.shape == (n_tokens2, k * attr_dim)
    assert bool(jnp.array_equal(out2, ref2)), "mismatch vs reference (test 2)"

    print("KERNEL_OK")
</pallas_src>

<mosaic_0001>
module attributes {stable_mosaic.version = 11 : i64} {
  func.func @_coemb_kernel(%arg0: i32, %arg1: memref<8x4xi32, #tpu.memory_space<vmem>>, %arg2: memref<10x128xf32, #tpu.memory_space<vmem>>, %arg3: memref<8x128xf32, #tpu.memory_space<vmem>>) attributes {dimension_semantics = [#tpu.dimension_semantics<parallel>], iteration_bounds = array<i64: 1>, scalar_prefetch = 0 : i64, scratch_operands = 0 : i64, tpu.core_type = #tpu.core_type<tc>, window_params = [{transform_indices = @transform_0, window_bounds = array<i64: 8, 4>}, {pipeline_mode = #tpu.pipeline_mode<synchronous>, transform_indices = @transform_1, window_bounds = array<i64: 10, 128>}, {transform_indices = @transform_2, window_bounds = array<i64: 8, 128>}]} {
    %c0 = arith.constant 0 : index
    %c0_0 = arith.constant 0 : index
    %0 = vector.load %arg1[%c0, %c0_0] : memref<8x4xi32, #tpu.memory_space<vmem>>, vector<8x4xi32>
    %1 = vector.extract_strided_slice %0 {offsets = [0, 0], sizes = [8, 1], strides = [1, 1]} : vector<8x4xi32> to vector<8x1xi32>
    %2 = vector.shape_cast %1 : vector<8x1xi32> to vector<8x1xi32>
    %3 = vector.broadcast %2 : vector<8x1xi32> to vector<8x32xi32>
    %4 = vector.extract_strided_slice %0 {offsets = [0, 1], sizes = [8, 1], strides = [1, 1]} : vector<8x4xi32> to vector<8x1xi32>
    %5 = vector.shape_cast %4 : vector<8x1xi32> to vector<8x1xi32>
    %6 = vector.broadcast %5 : vector<8x1xi32> to vector<8x32xi32>
    %7 = vector.extract_strided_slice %0 {offsets = [0, 2], sizes = [8, 1], strides = [1, 1]} : vector<8x4xi32> to vector<8x1xi32>
    %8 = vector.shape_cast %7 : vector<8x1xi32> to vector<8x1xi32>
    %9 = vector.broadcast %8 : vector<8x1xi32> to vector<8x32xi32>
    %10 = vector.extract_strided_slice %0 {offsets = [0, 3], sizes = [8, 1], strides = [1, 1]} : vector<8x4xi32> to vector<8x1xi32>
    %11 = vector.shape_cast %10 : vector<8x1xi32> to vector<8x1xi32>
    %12 = vector.broadcast %11 : vector<8x1xi32> to vector<8x32xi32>
    %13 = tpu.concatenate %3, %6, %9, %12 in 1 : vector<8x32xi32>, vector<8x32xi32>, vector<8x32xi32>, vector<8x32xi32> -> vector<8x128xi32>
    %c0_1 = arith.constant 0 : index
    %c0_2 = arith.constant 0 : index
    %14 = vector.load %arg2[%c0_1, %c0_2] : memref<10x128xf32, #tpu.memory_space<vmem>>, vector<10x128xf32>
    %cst = arith.constant 0.000000e+00 : f32
    %15 = vector.broadcast %cst : f32 to vector<8x128xf32>
    %c0_i32 = arith.constant 0 : i32
    %16 = vector.broadcast %c0_i32 : i32 to vector<8x128xi32>
    %17 = arith.cmpi eq, %13, %16 : vector<8x128xi32>
    %18 = vector.extract_strided_slice %14 {offsets = [0, 0], sizes = [1, 128], strides = [1, 1]} : vector<10x128xf32> to vector<1x128xf32>
    %19 = vector.shape_cast %18 : vector<1x128xf32> to vector<1x128xf32>
    %20 = vector.broadcast %19 : vector<1x128xf32> to vector<8x128xf32>
    %21 = arith.select %17, %20, %15 : vector<8x128xi1>, vector<8x128xf32>
    %c1_i32 = arith.constant 1 : i32
    %22 = vector.broadcast %c1_i32 : i32 to vector<8x128xi32>
    %23 = arith.cmpi eq, %13, %22 : vector<8x128xi32>
    %24 = vector.extract_strided_slice %14 {offsets = [1, 0], sizes = [1, 128], strides = [1, 1]} : vector<10x128xf32> to vector<1x128xf32>
    %25 = vector.shape_cast %24 : vector<1x128xf32> to vector<1x128xf32>
    %26 = vector.broadcast %25 : vector<1x128xf32> to vector<8x128xf32>
    %27 = arith.select %23, %26, %21 : vector<8x128xi1>, vector<8x128xf32>
    %c2_i32 = arith.constant 2 : i32
    %28 = vector.broadcast %c2_i32 : i32 to vector<8x128xi32>
    %29 = arith.cmpi eq, %13, %28 : vector<8x128xi32>
    %30 = vector.extract_strided_slice %14 {offsets = [2, 0], sizes = [1, 128], strides = [1, 1]} : vector<10x128xf32> to vector<1x128xf32>
    %31 = vector.shape_cast %30 : vector<1x128xf32> to vector<1x128xf32>
    %32 = vector.broadcast %31 : vector<1x128xf32> to vector<8x128xf32>
    %33 = arith.select %29, %32, %27 : vector<8x128xi1>, vector<8x128xf32>
    %c3_i32 = arith.constant 3 : i32
    %34 = vector.broadcast %c3_i32 : i32 to vector<8x128xi32>
    %35 = arith.cmpi eq, %13, %34 : vector<8x128xi32>
    %36 = vector.extract_strided_slice %14 {offsets = [3, 0], sizes = [1, 128], strides = [1, 1]} : vector<10x128xf32> to vector<1x128xf32>
    %37 = vector.shape_cast %36 : vector<1x128xf32> to vector<1x128xf32>
    %38 = vector.broadcast %37 : vector<1x128xf32> to vector<8x128xf32>
    %39 = arith.select %35, %38, %33 : vector<8x128xi1>, vector<8x128xf32>
    %c4_i32 = arith.constant 4 : i32
    %40 = vector.broadcast %c4_i32 : i32 to vector<8x128xi32>
    %41 = arith.cmpi eq, %13, %40 : vector<8x128xi32>
    %42 = vector.extract_strided_slice %14 {offsets = [4, 0], sizes = [1, 128], strides = [1, 1]} : vector<10x128xf32> to vector<1x128xf32>
    %43 = vector.shape_cast %42 : vector<1x128xf32> to vector<1x128xf32>
    %44 = vector.broadcast %43 : vector<1x128xf32> to vector<8x128xf32>
    %45 = arith.select %41, %44, %39 : vector<8x128xi1>, vector<8x128xf32>
    %c5_i32 = arith.constant 5 : i32
    %46 = vector.broadcast %c5_i32 : i32 to vector<8x128xi32>
    %47 = arith.cmpi eq, %13, %46 : vector<8x128xi32>
    %48 = vector.extract_strided_slice %14 {offsets = [5, 0], sizes = [1, 128], strides = [1, 1]} : vector<10x128xf32> to vector<1x128xf32>
    %49 = vector.shape_cast %48 : vector<1x128xf32> to vector<1x128xf32>
    %50 = vector.broadcast %49 : vector<1x128xf32> to vector<8x128xf32>
    %51 = arith.select %47, %50, %45 : vector<8x128xi1>, vector<8x128xf32>
    %c6_i32 = arith.constant 6 : i32
    %52 = vector.broadcast %c6_i32 : i32 to vector<8x128xi32>
    %53 = arith.cmpi eq, %13, %52 : vector<8x128xi32>
    %54 = vector.extract_strided_slice %14 {offsets = [6, 0], sizes = [1, 128], strides = [1, 1]} : vector<10x128xf32> to vector<1x128xf32>
    %55 = vector.shape_cast %54 : vector<1x128xf32> to vector<1x128xf32>
    %56 = vector.broadcast %55 : vector<1x128xf32> to vector<8x128xf32>
    %57 = arith.select %53, %56, %51 : vector<8x128xi1>, vector<8x128xf32>
    %c7_i32 = arith.constant 7 : i32
    %58 = vector.broadcast %c7_i32 : i32 to vector<8x128xi32>
    %59 = arith.cmpi eq, %13, %58 : vector<8x128xi32>
    %60 = vector.extract_strided_slice %14 {offsets = [7, 0], sizes = [1, 128], strides = [1, 1]} : vector<10x128xf32> to vector<1x128xf32>
    %61 = vector.shape_cast %60 : vector<1x128xf32> to vector<1x128xf32>
    %62 = vector.broadcast %61 : vector<1x128xf32> to vector<8x128xf32>
    %63 = arith.select %59, %62, %57 : vector<8x128xi1>, vector<8x128xf32>
    %c8_i32 = arith.constant 8 : i32
    %64 = vector.broadcast %c8_i32 : i32 to vector<8x128xi32>
    %65 = arith.cmpi eq, %13, %64 : vector<8x128xi32>
    %66 = vector.extract_strided_slice %14 {offsets = [8, 0], sizes = [1, 128], strides = [1, 1]} : vector<10x128xf32> to vector<1x128xf32>
    %67 = vector.shape_cast %66 : vector<1x128xf32> to vector<1x128xf32>
    %68 = vector.broadcast %67 : vector<1x128xf32> to vector<8x128xf32>
    %69 = arith.select %65, %68, %63 : vector<8x128xi1>, vector<8x128xf32>
    %c9_i32 = arith.constant 9 : i32
    %70 = vector.broadcast %c9_i32 : i32 to vector<8x128xi32>
    %71 = arith.cmpi eq, %13, %70 : vector<8x128xi32>
    %72 = vector.extract_strided_slice %14 {offsets = [9, 0], sizes = [1, 128], strides = [1, 1]} : vector<10x128xf32> to vector<1x128xf32>
    %73 = vector.shape_cast %72 : vector<1x128xf32> to vector<1x128xf32>
    %74 = vector.broadcast %73 : vector<1x128xf32> to vector<8x128xf32>
    %75 = arith.select %71, %74, %69 : vector<8x128xi1>, vector<8x128xf32>
    %c0_3 = arith.constant 0 : index
    %c0_4 = arith.constant 0 : index
    %76 = vector.load %arg3[%c0_3, %c0_4] : memref<8x128xf32, #tpu.memory_space<vmem>>, vector<8x128xf32>
    tpu.vector_store %arg3[%c0_3, %c0_4], %75 {strides = array<i32>} : memref<8x128xf32, #tpu.memory_space<vmem>>, vector<8x128xf32>,
    return
  }
  func.func @transform_0(%arg0: i32) -> (i32, i32) {
    %c0_i32 = arith.constant 0 : i32
    %c0_i32_0 = arith.constant 0 : i32
    return %arg0, %c0_i32 : i32, i32
  }
  func.func @transform_1(%arg0: i32) -> (i32, i32) {
    %c0_i32 = arith.constant 0 : i32
    %c0_i32_0 = arith.constant 0 : i32
    %c0_i32_1 = arith.constant 0 : i32
    return %c0_i32, %c0_i32_0 : i32, i32
  }
  func.func @transform_2(%arg0: i32) -> (i32, i32) {
    %c0_i32 = arith.constant 0 : i32
    %c0_i32_0 = arith.constant 0 : i32
    return %arg0, %c0_i32 : i32, i32
  }
}

</mosaic_0001>

<bundles_post_ra>
// kernel: tpu_custom_call.1
= control target key start
LH: loop header
LB: loop body
LE: loop exit
PB: predicated region body
PF: predicated region fallthrough
CT: control target
= control target key end

     0   :  { %7 = vsyncpa [#allocation3], 0  ;;  %s194_s0 = inlined_call_operand.vmem [shape: s32[8,4], index: 0, kind: input, shape index: {}]   ;;  %s195_s1 = inlined_call_operand.hbm [shape: f32[10,128], index: 1, kind: input, shape index: {}]   ;;  %s196_s2 = inlined_call_operand.hbm [shape: f32[8,128], index: 2, kind: output, shape index: {}]  }
   0x1   :  { %8 = vsyncpa [#allocation4], 0  ;;  %s15_s11 = sshll.u32 %s195_s1, 4  ;;  %s162_s12 = smov [#allocation2]   ;;  %s16_s11 = int_to_ptr.hbm [resolvable:$true] %s15_s11 }
   0x2   :  { %s17_s13 = sshll.u32 %s162_s12, 4  ;;  %s163_s14 = smov 128   ;;  %s18_s13 = int_to_ptr.vmem [resolvable:$true] %s17_s13 }
   0x3   :  { %s164_s15 = smov 8  }
   0x4   :  { %23 = dma.hbm_to_vmem [thread:$0]  %s16_s11, 256, %s18_s13, [#allocation3], %s163_s14, %s163_s14, %s164_s15  }
   0x5   :  { %158 = dma.done.wait [#allocation3], 256  }
   0x6   :  { %159 = vsyncadd [#allocation3], 4294967040  ;;  %v165_v0 = vmov 0   ;;  %v166_v1 = vmov 2   ;;  %v28_v2 = vld [vmem:[%s194_s0] sm:$0xff]  ;;  %v167_v3 = vmov 1  }
   0x7   :  { %105 = vset.pattern.permute.xlu0 %v165_v0  ;;  %107 = vset.pattern.permute.xlu1 %v166_v1  ;;  %v168_v4 = vmov 3   ;;  %vm41_vm0 = vcmask 261120   ;;  %v47_v7 = vld [vmem:[#allocation2] sm:$0xff]  ;;  %vm43_vm1 = vcmask 523264   ;;  %vm45_vm2 = vcmask 785408   ;;  %s169_s0 = smov [#allocation5]  }
   0x8   :  { %30 = vperm.xlu0 %105, %v28_v2   ;;  %36 = vperm.xlu1 %107, %v28_v2   ;;  %v50_v11 = vperm.slane %v47_v7, 0  ;;  %v53_v13 = vperm.slane %v47_v7, 1  ;;  %v56_v15 = vperm.slane %v47_v7, 2  ;;  %v59_v16 = vperm.slane %v47_v7, 3  ;;  %v48_v19 = vld [vmem:[#allocation2 + $0x8] sm:$0x3] }
   0x9   :  { %v62_v18 = vperm.slane %v47_v7, 4  ;;  %v65_v21 = vperm.slane %v47_v7, 5  ;;  %v68_v23 = vperm.slane %v47_v7, 6  ;;  %v71_v25 = vperm.slane %v47_v7, 7  ;;  %s85_s1 = sshll.u32 %s169_s0, 4  ;;  %s87_s20 = sshll.u32 %s196_s2, 4  ;;  %s86_s1 = int_to_ptr.vmem [resolvable:$true] %s85_s1  ;;  %s88_s20 = int_to_ptr.hbm [resolvable:$true] %s87_s20 }
   0xa   :  { %v74_v27 = vperm.slane %v48_v19, 0  ;;  %v77_v29 = vperm.slane %v48_v19, 1 }
  0x10   :  { %106 = vset.pattern.permute.xlu0 %v167_v3  ;;  %108 = vset.pattern.permute.xlu1 %v168_v4 }
  0x11   :  { %33 = vperm.xlu0 %106, %v28_v2   ;;  %39 = vperm.xlu1 %108, %v28_v2  }
  0x19   :  { %109 = vset.pattern.permute.xlu0 %v168_v4 }
  0x7a   :  { %v31_v5 = vpop.permute.xlu0 %30  ;;  %v37_v6 = vpop.permute.xlu1 %36 }
  0x83   :  { %v34_v8 = vpop.permute.xlu0 %33  ;;  %v40_v9 = vpop.permute.xlu1 %39 }
  0x84   :  { %v42_v10 = vsel %vm41_vm0, %v31_v5, %v34_v8 }
  0x85   :  { %v44_v12 = vsel %vm43_vm1, %v42_v10, %v37_v6 }
  0x86   :  { %v46_v14 = vsel %vm45_vm2, %v44_v12, %v40_v9 }
  0x87   :  { %vm49_vm3 = vcmp.eq.s32.totalorder %v46_v14, 0  ;;  %vm52_vm4 = vcmp.eq.s32.totalorder %v46_v14, 1  ;;  %vm55_vm5 = vcmp.eq.s32.totalorder %v46_v14, 2  ;;  %vm58_vm6 = vcmp.eq.s32.totalorder %v46_v14, 3 }
  0x88   :  { %v51_v17 = vsel %vm49_vm3, %v50_v11, 0.0  ;;  %vm61_vm7 = vcmp.eq.s32.totalorder %v46_v14, 4  ;;  %vm64_vm8 = vcmp.eq.s32.totalorder %v46_v14, 5  ;;  %vm67_vm9 = vcmp.eq.s32.totalorder %v46_v14, 6 }
  0x89   :  { %v54_v20 = vsel %vm52_vm4, %v53_v13, %v51_v17  ;;  %vm70_vm10 = vcmp.eq.s32.totalorder %v46_v14, 7  ;;  %vm73_vm11 = vcmp.eq.s32.totalorder %v46_v14, 8  ;;  %vm76_vm12 = vcmp.eq.s32.totalorder %v46_v14, 9 }
  0x8a   :  { %v57_v22 = vsel %vm55_vm5, %v56_v15, %v54_v20 }
  0x8b   :  { %v60_v24 = vsel %vm58_vm6, %v59_v16, %v57_v22 }
  0x8c   :  { %v63_v26 = vsel %vm61_vm7, %v62_v18, %v60_v24 }
  0x8d   :  { %v66_v28 = vsel %vm64_vm8, %v65_v21, %v63_v26 }
  0x8e   :  { %v69_v30 = vsel %vm67_vm9, %v68_v23, %v66_v28 }
  0x8f   :  { %v72_v31 = vsel %vm70_vm10, %v71_v25, %v69_v30 }
  0x90   :  { %v75_v32 = vsel %vm73_vm11, %v74_v27, %v72_v31 }
  0x91   :  { %v78_v33 = vsel %vm76_vm12, %v77_v29, %v75_v32 }
  0x92   :  { %79 = vst [vmem:[#allocation5] sm:$0xff] %v78_v33 }
  0x93   :  { %90 = dma.vmem_to_hbm [thread:$0]  %s86_s1, 128, %s88_s20, [#allocation4]  }
  0x94   :  { %160 = dma.done.wait [#allocation4], 128  }
  0x95   :  { %161 = vsyncadd [#allocation4], 4294967168 }
  0x96   :  { %95 = vsyncpa [#allocation3], 1 }
  0x97   :  { %96 = vsyncpa [#allocation4], 1 }

</bundles_post_ra>
